<compile_context>
chip_gen: v7x
topology: tpu7x:2x2x1
jax: 0.10.0
libtpu: 0.0.40
codegen_flags: <defaults>
</compile_context>

<pallas_src>
import jax
import jax.numpy as jnp
from jax.experimental import pallas as pl
from jax.experimental.pallas import tpu as pltpu

# ----- config (small, consistent with the module) -----
ELEMENT_SIZE = 16            # num_embeddings S; MaxPool1d kernel = S // 2 = 8
ELEMENT_EMBEDDING_SIZE = 8   # embedding dim E
FEATURE_SIZE = 32            # conv out channels F
BATCH = 2
SEQ_LEN = ELEMENT_SIZE // 2  # sequence length L; pool window == L -> pooled length 1


def element_cnn_kernel(idx_ref, ftab_ref, bias_ref, out_ref):
    """Whole ElementCNN forward in one invocation (everything fits VMEM/SMEM).

    idx_ref : SMEM (B*L,) int32   flattened element indices (scalar reads)
    ftab_ref: VMEM (S, F)  f32    fused table = embedding_table @ conv_weight
    bias_ref: VMEM (1, F)  f32    Conv1d bias
    out_ref : VMEM (B, F)  f32    pooled features (== PyTorch out.view(-1, F))
    """
    b_sz, f = out_ref.shape
    l = idx_ref.shape[0] // b_sz

    # Embedding gather + Conv1d(k=1) is a row-selection from the fused table
    # (exact selection, no matmul). MaxPool1d over the full sequence becomes a
    # running jnp.maximum over the gathered rows (VPU only).
    rows = []
    for b in range(b_sz):                                   # static unroll, B = 2
        acc = ftab_ref[pl.ds(idx_ref[b * l], 1), :]         # (1, F)
        for j in range(1, l):                               # static unroll, L = 8
            acc = jnp.maximum(acc, ftab_ref[pl.ds(idx_ref[b * l + j], 1), :])
        rows.append(acc)
    pooled = jnp.concatenate(rows, axis=0)                  # (B, F)

    # Bias add and ReLU commute with the max (bias is per-feature constant,
    # ReLU is monotone) -> apply once, then ONE dense store.
    out_ref[...] = jnp.maximum(pooled + bias_ref[...], 0.0)


def prepare_params(table, conv_w_pt, conv_b):
    """One-time parameter prep (weights are static across forward calls).

    table     : (S, E)     Embedding weight
    conv_w_pt : (F, E, 1)  PyTorch Conv1d weight layout
    conv_b    : (F,)       Conv1d bias
    Returns fused_table (S, F) f32 and bias2d (1, F) f32.
    """
    conv_w = jnp.transpose(conv_w_pt[:, :, 0], (1, 0))      # (E, F)
    # Algebraic fusion: gather(table)[.] @ W == gather(table @ W)[.]
    fused_table = jnp.dot(table, conv_w,
                          precision=jax.lax.Precision.HIGHEST)  # (S, F)
    return fused_table.astype(jnp.float32), conv_b.reshape(1, -1).astype(jnp.float32)


@jax.jit
def element_cnn_forward(indices, fused_table, bias2d):
    """indices: (B, L) int32; fused_table: (S, F) f32; bias2d: (1, F) f32.

    Returns (B, F) float32 == PyTorch out.view(-1, feature_size).
    """
    B, L = indices.shape
    S, F = fused_table.shape
    idx_flat = indices.reshape(B * L).astype(jnp.int32)     # (B*L,) -> SMEM

    return pl.pallas_call(
        element_cnn_kernel,
        out_shape=jax.ShapeDtypeStruct((B, F), jnp.float32),
        in_specs=[
            pl.BlockSpec(memory_space=pltpu.MemorySpace.SMEM),   # indices
            pl.BlockSpec(memory_space=pltpu.MemorySpace.VMEM),   # fused table
            pl.BlockSpec(memory_space=pltpu.MemorySpace.VMEM),   # bias
        ],
        out_specs=pl.BlockSpec(memory_space=pltpu.MemorySpace.VMEM),
    )(idx_flat, fused_table, bias2d)


def reference_forward(indices, table, conv_w_pt, conv_b):
    """Pure-JAX reference mirroring the PyTorch forward exactly."""
    conv_w = jnp.transpose(conv_w_pt[:, :, 0], (1, 0))      # (E, F)
    embed = table[indices]                                  # (B, L, E)
    conv = jnp.einsum("ble,ef->blf", embed, conv_w,
                      precision=jax.lax.Precision.HIGHEST) + conv_b  # Conv1d k=1
    act = jnp.maximum(conv, 0.0)                            # ReLU
    pooled = jnp.max(act, axis=1)                           # MaxPool1d(k=S//2) over L=S//2
    return pooled                                           # == out.view(-1, F)


if __name__ == "__main__":
    key = jax.random.PRNGKey(0)
    k_tab, k_w, k_b, k_idx = jax.random.split(key, 4)

    # Deterministic synthetic parameters (shapes from __init__):
    #   Embedding(num_embeddings=S, embedding_dim=E) -> table (S, E)
    #   Conv1d(E, F, kernel_size=1)                  -> weight (F, E, 1), bias (F,)
    table = jax.random.normal(k_tab, (ELEMENT_SIZE, ELEMENT_EMBEDDING_SIZE), jnp.float32)
    conv_w_pt = 0.1 * jax.random.normal(
        k_w, (FEATURE_SIZE, ELEMENT_EMBEDDING_SIZE, 1), jnp.float32)
    conv_b = 0.1 * jax.random.normal(k_b, (FEATURE_SIZE,), jnp.float32)
    # TODO(synk): fc1 / fc2 are declared in the PyTorch __init__ but unused in forward.

    indices = jax.random.randint(
        k_idx, (BATCH, SEQ_LEN), 0, ELEMENT_SIZE, dtype=jnp.int32)

    # One-time parameter prep (hoisted fused table), then a single-dispatch forward.
    fused_table, bias2d = prepare_params(table, conv_w_pt, conv_b)

    out = element_cnn_forward(indices, fused_table, bias2d)
    out = jax.block_until_ready(out)

    ref = reference_forward(indices, table, conv_w_pt, conv_b)
    assert out.shape == (BATCH, FEATURE_SIZE)
    assert jnp.allclose(out, ref, atol=1e-5, rtol=1e-5), "kernel does not match reference"

    print("KERNEL_OK")
</pallas_src>

<mosaic_0001>
module attributes {stable_mosaic.version = 11 : i64} {
  func.func @element_cnn_kernel(%arg0: memref<16xi32, #tpu.memory_space<smem>>, %arg1: memref<16x32xf32, #tpu.memory_space<vmem>>, %arg2: memref<1x32xf32, #tpu.memory_space<vmem>>, %arg3: memref<2x32xf32, #tpu.memory_space<vmem>>) attributes {dimension_semantics = [], scalar_prefetch = 0 : i64, scratch_operands = 0 : i64, tpu.core_type = #tpu.core_type<tc>} {
    %c0 = arith.constant 0 : index
    %0 = memref.load %arg0[%c0] : memref<16xi32, #tpu.memory_space<smem>>
    %1 = arith.index_cast %0 : i32 to index
    %c0_0 = arith.constant 0 : index
    %2 = vector.load %arg1[%1, %c0_0] : memref<16x32xf32, #tpu.memory_space<vmem>>, vector<1x32xf32>
    %c1 = arith.constant 1 : index
    %3 = memref.load %arg0[%c1] : memref<16xi32, #tpu.memory_space<smem>>
    %4 = arith.index_cast %3 : i32 to index
    %c0_1 = arith.constant 0 : index
    %5 = vector.load %arg1[%4, %c0_1] : memref<16x32xf32, #tpu.memory_space<vmem>>, vector<1x32xf32>
    %6 = arith.maximumf %2, %5 : vector<1x32xf32>
    %c2 = arith.constant 2 : index
    %7 = memref.load %arg0[%c2] : memref<16xi32, #tpu.memory_space<smem>>
    %8 = arith.index_cast %7 : i32 to index
    %c0_2 = arith.constant 0 : index
    %9 = vector.load %arg1[%8, %c0_2] : memref<16x32xf32, #tpu.memory_space<vmem>>, vector<1x32xf32>
    %10 = arith.maximumf %6, %9 : vector<1x32xf32>
    %c3 = arith.constant 3 : index
    %11 = memref.load %arg0[%c3] : memref<16xi32, #tpu.memory_space<smem>>
    %12 = arith.index_cast %11 : i32 to index
    %c0_3 = arith.constant 0 : index
    %13 = vector.load %arg1[%12, %c0_3] : memref<16x32xf32, #tpu.memory_space<vmem>>, vector<1x32xf32>
    %14 = arith.maximumf %10, %13 : vector<1x32xf32>
    %c4 = arith.constant 4 : index
    %15 = memref.load %arg0[%c4] : memref<16xi32, #tpu.memory_space<smem>>
    %16 = arith.index_cast %15 : i32 to index
    %c0_4 = arith.constant 0 : index
    %17 = vector.load %arg1[%16, %c0_4] : memref<16x32xf32, #tpu.memory_space<vmem>>, vector<1x32xf32>
    %18 = arith.maximumf %14, %17 : vector<1x32xf32>
    %c5 = arith.constant 5 : index
    %19 = memref.load %arg0[%c5] : memref<16xi32, #tpu.memory_space<smem>>
    %20 = arith.index_cast %19 : i32 to index
    %c0_5 = arith.constant 0 : index
    %21 = vector.load %arg1[%20, %c0_5] : memref<16x32xf32, #tpu.memory_space<vmem>>, vector<1x32xf32>
    %22 = arith.maximumf %18, %21 : vector<1x32xf32>
    %c6 = arith.constant 6 : index
    %23 = memref.load %arg0[%c6] : memref<16xi32, #tpu.memory_space<smem>>
    %24 = arith.index_cast %23 : i32 to index
    %c0_6 = arith.constant 0 : index
    %25 = vector.load %arg1[%24, %c0_6] : memref<16x32xf32, #tpu.memory_space<vmem>>, vector<1x32xf32>
    %26 = arith.maximumf %22, %25 : vector<1x32xf32>
    %c7 = arith.constant 7 : index
    %27 = memref.load %arg0[%c7] : memref<16xi32, #tpu.memory_space<smem>>
    %28 = arith.index_cast %27 : i32 to index
    %c0_7 = arith.constant 0 : index
    %29 = vector.load %arg1[%28, %c0_7] : memref<16x32xf32, #tpu.memory_space<vmem>>, vector<1x32xf32>
    %30 = arith.maximumf %26, %29 : vector<1x32xf32>
    %c8 = arith.constant 8 : index
    %31 = memref.load %arg0[%c8] : memref<16xi32, #tpu.memory_space<smem>>
    %32 = arith.index_cast %31 : i32 to index
    %c0_8 = arith.constant 0 : index
    %33 = vector.load %arg1[%32, %c0_8] : memref<16x32xf32, #tpu.memory_space<vmem>>, vector<1x32xf32>
    %c9 = arith.constant 9 : index
    %34 = memref.load %arg0[%c9] : memref<16xi32, #tpu.memory_space<smem>>
    %35 = arith.index_cast %34 : i32 to index
    %c0_9 = arith.constant 0 : index
    %36 = vector.load %arg1[%35, %c0_9] : memref<16x32xf32, #tpu.memory_space<vmem>>, vector<1x32xf32>
    %37 = arith.maximumf %33, %36 : vector<1x32xf32>
    %c10 = arith.constant 10 : index
    %38 = memref.load %arg0[%c10] : memref<16xi32, #tpu.memory_space<smem>>
    %39 = arith.index_cast %38 : i32 to index
    %c0_10 = arith.constant 0 : index
    %40 = vector.load %arg1[%39, %c0_10] : memref<16x32xf32, #tpu.memory_space<vmem>>, vector<1x32xf32>
    %41 = arith.maximumf %37, %40 : vector<1x32xf32>
    %c11 = arith.constant 11 : index
    %42 = memref.load %arg0[%c11] : memref<16xi32, #tpu.memory_space<smem>>
    %43 = arith.index_cast %42 : i32 to index
    %c0_11 = arith.constant 0 : index
    %44 = vector.load %arg1[%43, %c0_11] : memref<16x32xf32, #tpu.memory_space<vmem>>, vector<1x32xf32>
    %45 = arith.maximumf %41, %44 : vector<1x32xf32>
    %c12 = arith.constant 12 : index
    %46 = memref.load %arg0[%c12] : memref<16xi32, #tpu.memory_space<smem>>
    %47 = arith.index_cast %46 : i32 to index
    %c0_12 = arith.constant 0 : index
    %48 = vector.load %arg1[%47, %c0_12] : memref<16x32xf32, #tpu.memory_space<vmem>>, vector<1x32xf32>
    %49 = arith.maximumf %45, %48 : vector<1x32xf32>
    %c13 = arith.constant 13 : index
    %50 = memref.load %arg0[%c13] : memref<16xi32, #tpu.memory_space<smem>>
    %51 = arith.index_cast %50 : i32 to index
    %c0_13 = arith.constant 0 : index
    %52 = vector.load %arg1[%51, %c0_13] : memref<16x32xf32, #tpu.memory_space<vmem>>, vector<1x32xf32>
    %53 = arith.maximumf %49, %52 : vector<1x32xf32>
    %c14 = arith.constant 14 : index
    %54 = memref.load %arg0[%c14] : memref<16xi32, #tpu.memory_space<smem>>
    %55 = arith.index_cast %54 : i32 to index
    %c0_14 = arith.constant 0 : index
    %56 = vector.load %arg1[%55, %c0_14] : memref<16x32xf32, #tpu.memory_space<vmem>>, vector<1x32xf32>
    %57 = arith.maximumf %53, %56 : vector<1x32xf32>
    %c15 = arith.constant 15 : index
    %58 = memref.load %arg0[%c15] : memref<16xi32, #tpu.memory_space<smem>>
    %59 = arith.index_cast %58 : i32 to index
    %c0_15 = arith.constant 0 : index
    %60 = vector.load %arg1[%59, %c0_15] : memref<16x32xf32, #tpu.memory_space<vmem>>, vector<1x32xf32>
    %61 = arith.maximumf %57, %60 : vector<1x32xf32>
    %62 = tpu.concatenate %30, %61 in 0 : vector<1x32xf32>, vector<1x32xf32> -> vector<2x32xf32>
    %c0_16 = arith.constant 0 : index
    %c0_17 = arith.constant 0 : index
    %63 = vector.load %arg2[%c0_16, %c0_17] : memref<1x32xf32, #tpu.memory_space<vmem>>, vector<1x32xf32>
    %64 = vector.broadcast %63 : vector<1x32xf32> to vector<2x32xf32>
    %65 = arith.addf %62, %64 : vector<2x32xf32>
    %cst = arith.constant 0.000000e+00 : f32
    %66 = vector.broadcast %cst : f32 to vector<2x32xf32>
    %67 = arith.maximumf %65, %66 : vector<2x32xf32>
    %c0_18 = arith.constant 0 : index
    %c0_19 = arith.constant 0 : index
    %68 = vector.load %arg3[%c0_18, %c0_19] : memref<2x32xf32, #tpu.memory_space<vmem>>, vector<2x32xf32>
    tpu.vector_store %arg3[%c0_18, %c0_19], %67 {strides = array<i32>} : memref<2x32xf32, #tpu.memory_space<vmem>>, vector<2x32xf32>,
    return
  }
}

</mosaic_0001>

<bundles_post_ra>
// kernel: element_cnn_forward.1
= control target key start
LH: loop header
LB: loop body
LE: loop exit
PB: predicated region body
PF: predicated region fallthrough
CT: control target
= control target key end

     0   :  { %8 = vsyncpa [#allocation5], 0  ;;  %s296_s0 = inlined_call_operand.vmem [shape: s32[16], index: 0, kind: input, shape index: {}]   ;;  %s297_s1 = inlined_call_operand.hbm [shape: f32[16,32], index: 1, kind: input, shape index: {}]   ;;  %s298_s2 = inlined_call_operand.vmem [shape: f32[1,32], index: 2, kind: input, shape index: {}]   ;;  %s299_s3 = inlined_call_operand.hbm [shape: f32[2,32], index: 3, kind: output, shape index: {}]  }
   0x1   :  { %9 = vsyncpa [#allocation3], 0 }
   0x2   :  { %10 = vsyncpa [#allocation4], 0  ;;  %s17_s14 = sshll.u32 %s296_s0, 4  ;;  %s18_s14 = int_to_ptr.vmem [resolvable:$true] %s17_s14 }
   0x3   :  { %s173_s15 = scalar_lea.vmem %s18_s14, 16  ;;  %p178_p1 = scmp.lt.s32.totalorder %s18_s14, %s18_s14 }
   0x4   :  { %p174_p0 = scmp.ne.s32.totalorder %s18_s14, %s173_s15  ;;  %p179_p2 = scmp.lt.s32.totalorder %s173_s15, %s173_s15 }
   0x6   :  { %p180_p3 = por %p179_p2, %p178_p1 }
   0x8   :  { %p181_p4 = pnand %p180_p3, %p174_p0 }
   0xa   :  { %184 = shalt.err (!%p181_p4)
}
   0xb   :  { %s235_s16 = smov [#allocation2]   ;;  %s236_s17 = smov [#allocation6]  }
   0xc   :  { %20 = dma.vmem_to_smem %s18_s14, 16, %s235_s16, [#allocation5]  }
   0xd   :  { %s26_s18 = sshll.u32 %s236_s17, 4  ;;  %s185_s21 = scalar_lea.hbm %s297_s1, 256  ;;  %s27_s18 = int_to_ptr.vmem [resolvable:$true] %s26_s18 }
   0xe   :  { %p186_p5 = scmp.ne.s32.totalorder %s297_s1, %s185_s21  ;;  %p189_p6 = scmp.lt.u32.totalorder %s185_s21, %s297_s1 }
  0x10   :  { %p191_p7 = pnand %p189_p6, %p186_p5 }
  0x12   :  { %194 = shalt.err (!%p191_p7)
}
  0x13   :  { %s195_s25 = scalar_lea.vmem %s27_s18, 256  ;;  %p200_p9 = scmp.lt.s32.totalorder %s27_s18, %s27_s18 }
  0x14   :  { %p196_p8 = scmp.ne.s32.totalorder %s27_s18, %s195_s25  ;;  %p201_p10 = scmp.lt.s32.totalorder %s195_s25, %s195_s25 }
  0x16   :  { %p202_p11 = por %p201_p10, %p200_p9 }
  0x18   :  { %p203_p12 = pnand %p202_p11, %p196_p8 }
  0x1a   :  { %206 = shalt.err (!%p203_p12)
}
  0x1b   :  { %s237_s26 = smov 128   ;;  %s238_s27 = smov 8  }
  0x1c   :  { %32 = dma.hbm_to_vmem [thread:$0]  %s297_s1, 256, %s27_s18, [#allocation3], %s237_s26, %s237_s26, %s238_s27  }
  0x1d   :  { %229 = dma.done.wait [#allocation5], 16  }
  0x1e   :  { %230 = vsyncadd [#allocation5], 4294967280 }
  0x1f   :  { %231 = dma.done.wait [#allocation3], 256  }
  0x20   :  { %232 = vsyncadd [#allocation3], 4294967040 }
  0x21   :  { %41 = sfence }
  0x22   :  { %s42_s30 = sld [smem:[#allocation2]]  ;;  %s152_s4 = sld [smem:[#allocation2 + $0x1]]  ;;  %vm107_vm0 = vcmask 1040384   ;;  %v167_v31 = vld [vmem:[%s298_s2] ss:$0 sm:$0xff]  ;;  %vm118_vm1 = vcmask 254976  }
  0x23   :  { %s153_s5 = sld [smem:[#allocation2 + $0x2]]  ;;  %s154_s6 = sld [smem:[#allocation2 + $0x3]] }
  0x24   :  { %s155_s7 = sld [smem:[#allocation2 + $0x4]]  ;;  %s275_s8 = sld [smem:[#allocation2 + $0x5]] }
  0x25   :  { %s159_s9 = sld [smem:[#allocation2 + $0x8]]  ;;  %s160_s10 = sld [smem:[#allocation2 + $0x9]] }
  0x26   :  { %s161_s11 = sld [smem:[#allocation2 + $0xa]]  ;;  %s162_s12 = sld [smem:[#allocation2 + $0xb]] }
  0x27   :  { %s157_s15 = sld [smem:[#allocation2 + $0x6]]  ;;  %s277_s17 = sld [smem:[#allocation2 + $0x7]] }
  0x28   :  { %s43_s13 = scalar_lea.vmem [#allocation6], %s42_s30  ;;  %s46_s14 = scalar_lea.vmem [#allocation6], %s152_s4 }
  0x29   :  { %v44_v0 = vld [vmem:[%s43_s13] sm:$0x1]  ;;  %s50_s1 = scalar_lea.vmem [#allocation6], %s153_s5  ;;  %s54_s16 = scalar_lea.vmem [#allocation6], %s154_s6 }
  0x2a   :  { %v47_v1 = vld [vmem:[%s46_s14] sm:$0x1]  ;;  %s58_s18 = scalar_lea.vmem [#allocation6], %s155_s7  ;;  %s163_s22 = sld [smem:[#allocation2 + $0xc]] }
  0x2b   :  { %v48_v2 = vmax.f32 %v44_v0, %v47_v1  ;;  %v51_v3 = vld [vmem:[%s50_s1] sm:$0x1]  ;;  %s74_s19 = scalar_lea.vmem [#allocation6], %s159_s9  ;;  %s77_s20 = scalar_lea.vmem [#allocation6], %s160_s10 }
  0x2c   :  { %v55_v4 = vld [vmem:[%s54_s16] sm:$0x1]  ;;  %s81_s21 = scalar_lea.vmem [#allocation6], %s161_s11  ;;  %s85_s23 = scalar_lea.vmem [#allocation6], %s162_s12 }
  0x2d   :  { %v52_v5 = vmax.f32 %v48_v2, %v51_v3  ;;  %v59_v6 = vld [vmem:[%s58_s18] sm:$0x1]  ;;  %s164_s0 = sld [smem:[#allocation2 + $0xd]]  ;;  %s165_s24 = sld [smem:[#allocation2 + $0xe]] }
  0x2e   :  { %v75_v7 = vld [vmem:[%s74_s19] sm:$0x1]  ;;  %s166_s25 = sld [smem:[#allocation2 + $0xf]]  ;;  %s62_s26 = scalar_lea.vmem [#allocation6], %s275_s8 }
  0x2f   :  { %v78_v8 = vld [vmem:[%s77_s20] sm:$0x1]  ;;  %v56_v9 = vmax.f32 %v52_v5, %v55_v4  ;;  %s66_s27 = scalar_lea.vmem [#allocation6], %s157_s15  ;;  %s70_s4 = scalar_lea.vmem [#allocation6], %s277_s17 }
  0x30   :  { %v79_v10 = vmax.f32 %v75_v7, %v78_v8  ;;  %v82_v11 = vld [vmem:[%s81_s21] sm:$0x1]  ;;  %s89_s28 = scalar_lea.vmem [#allocation6], %s163_s22  ;;  %s239_s8 = smov [#allocation7]  }
  0x31   :  { %v86_v12 = vld [vmem:[%s85_s23] sm:$0x1]  ;;  %v60_v13 = vmax.f32 %v56_v9, %v59_v6  ;;  %s126_s9 = sshll.u32 %s239_s8, 4  ;;  %s127_s9 = int_to_ptr.vmem [resolvable:$true] %s126_s9 }
  0x32   :  { %v83_v14 = vmax.f32 %v79_v10, %v82_v11  ;;  %v63_v15 = vld [vmem:[%s62_s26] sm:$0x1]  ;;  %s207_s10 = scalar_lea.vmem %s127_s9, 32  ;;  %p212_p0 = scmp.lt.s32.totalorder %s127_s9, %s127_s9 }
  0x33   :  { %v64_v17 = vmax.f32 %v60_v13, %v63_v15  ;;  %v67_v18 = vld [vmem:[%s66_s27] sm:$0x1]  ;;  %s93_s29 = scalar_lea.vmem [#allocation6], %s164_s0  ;;  %s97_s30 = scalar_lea.vmem [#allocation6], %s165_s24 }
  0x34   :  { %v87_v16 = vmax.f32 %v83_v14, %v86_v12  ;;  %v90_v19 = vld [vmem:[%s89_s28] sm:$0x1]  ;;  %s101_s5 = scalar_lea.vmem [#allocation6], %s166_s25  ;;  %p208_p13 = scmp.ne.s32.totalorder %s127_s9, %s207_s10 }
  0x35   :  { %v94_v21 = vld [vmem:[%s93_s29] sm:$0x1]  ;;  %v68_v23 = vmax.f32 %v64_v17, %v67_v18  ;;  %p213_p1 = scmp.lt.s32.totalorder %s207_s10, %s207_s10 }
  0x36   :  { %v91_v20 = vmax.f32 %v87_v16, %v90_v19  ;;  %v98_v22 = vld [vmem:[%s97_s30] sm:$0x1] }
  0x37   :  { %v71_v25 = vld [vmem:[%s70_s4] sm:$0x1]  ;;  %p214_p2 = por %p213_p1, %p212_p0 }
  0x38   :  { %v95_v24 = vmax.f32 %v91_v20, %v94_v21  ;;  %v102_v26 = vld [vmem:[%s101_s5] sm:$0x1]  ;;  %v72_v28 = vmax.f32 %v68_v23, %v71_v25 }
  0x39   :  { %p215_p3 = pnand %p214_p2, %p208_p13 }
  0x3a   :  { %v99_v27 = vmax.f32 %v95_v24, %v98_v22 }
  0x3c   :  { %v103_v29 = vmax.f32 %v99_v27, %v102_v26 }
  0x3e   :  { %v105_v30 = vrot.slane %v103_v29, 7 }
  0x40   :  { %v108_v32 = vsel %vm107_vm0, %v72_v28, %v105_v30 }
  0x41   :  { %v116_v33 = vadd.f32 %v167_v31, %v108_v32 }
  0x43   :  { %v117_v34 = vmax.f32 %v116_v33, 0.0 }
  0x45   :  { %119 = vst.msk [vmem:[#allocation7] sm:$0x3] %vm118_vm1, %v117_v34 }
  0x46   :  { %218 = shalt.err (!%p215_p3)
}
  0x47   :  { %s219_s13 = scalar_lea.hbm %s299_s3, 32 }
  0x48   :  { %p220_p4 = scmp.ne.s32.totalorder %s299_s3, %s219_s13  ;;  %p223_p5 = scmp.lt.u32.totalorder %s219_s13, %s299_s3 }
  0x4a   :  { %p225_p6 = pnand %p223_p5, %p220_p4 }
  0x4c   :  { %228 = shalt.err (!%p225_p6)
}
  0x4d   :  { %129 = dma.vmem_to_hbm [thread:$0]  %s127_s9, 32, %s299_s3, [#allocation4]  }
  0x4e   :  { %233 = dma.done.wait [#allocation4], 32  }
  0x4f   :  { %234 = vsyncadd [#allocation4], 4294967264 }
  0x50   :  { %133 = vsyncpa [#allocation3], 1 }
  0x51   :  { %134 = vsyncpa [#allocation4], 1 }
  0x52   :  { %135 = vsyncpa [#allocation5], 1 }

</bundles_post_ra>
